<compile_context>
chip_gen: v5e
topology: v5e:2x2
jax: 0.10.0
libtpu: 0.0.40
codegen_flags: <defaults>
</compile_context>

<pallas_src>
import functools

import jax
import jax.numpy as jnp
from jax.experimental import pallas as pl
from jax.experimental.pallas import tpu as pltpu


def _round_up(v, m):
    return (v + m - 1) // m * m


def _num_tensorcores():
    """v7x exposes 2 TensorCores per chip; v5e / v6e are single-TC."""
    try:
        kind = jax.devices()[0].device_kind.lower()
    except Exception:
        return 1
    return 2 if ("v7" in kind or "7x" in kind) else 1


def _vmem_capacity_bytes():
    try:
        info = pltpu.get_tpu_info()
        return int(getattr(info, "vmem_capacity_bytes", 64 << 20))
    except Exception:
        return 64 << 20  # conservative fallback (v7x per-TC size)


def mlp_kernel(x_ref, w1t_ref, w2t_ref, bias_ref, o_ref):
    d_out = o_ref.shape[-1]
    b = bias_ref[...]                               # (2, d_pad), f32

    # Cast activations to the MXU-native dtype in-kernel (no wrapper pass).
    x = x_ref[...].astype(w1t_ref.dtype)            # (tm, D) -> bf16

    # h = relu(x @ W1^T + b1) : (tm, d_pad), f32 accumulation.
    h = jnp.dot(x, w1t_ref[...], preferred_element_type=jnp.float32)
    h = jnp.maximum(h + b[0:1, :], 0.0)
    # INVARIANT: the padded lanes of h are relu(0 @ 0 + 0) == 0 (zero-padded
    # W1^T columns and b1 lanes, and relu(0) == 0), so they contribute nothing
    # to the second matmul.  Swapping in an activation with f(0) != 0 would
    # silently break this.

    # y = h @ W2^T + b2 : (tm, D).  No ReLU after net2, per the module.
    y = jnp.dot(h.astype(w2t_ref.dtype), w2t_ref[...],
                preferred_element_type=jnp.float32)
    o_ref[...] = (y + b[1:2, :d_out]).astype(o_ref.dtype)


def prepare_params(w1, b1, w2, b2, *, compute_dtype=jnp.bfloat16):
    """One-time parameter prep (init time, NOT per forward call)."""
    d = w1.shape[0]
    d_pad = _round_up(d, 128)

    # W1^T: (D, d_pad) -- K unpadded (matches raw x), N padded to 128 lanes so
    # the intermediate h is lane-dense.
    w1t = jnp.zeros((d, d_pad), compute_dtype).at[:, :d].set(
        w1.T.astype(compute_dtype))
    # W2^T: (d_pad, D) -- K padded (matches h), N unpadded so the kernel emits
    # (B, D) directly and no output-slice pass is needed.
    w2t = jnp.zeros((d_pad, d), compute_dtype).at[:d, :].set(
        w2.T.astype(compute_dtype))

    # Both biases in a single lane-dense (2, d_pad) f32 block (one DMA).
    # Padded lanes MUST stay zero (see INVARIANT in mlp_kernel).
    biases = jnp.zeros((2, d_pad), jnp.float32)
    biases = biases.at[0, :d].set(b1.astype(jnp.float32))
    biases = biases.at[1, :d].set(b2.astype(jnp.float32))
    return w1t, w2t, biases


@functools.partial(jax.jit, static_argnames=("block_m", "out_dtype"))
def mlp_forward(x, w1t, w2t, biases, *, block_m=512, out_dtype=None):
    B, D = x.shape
    d_pad = w1t.shape[1]
    out_dtype = x.dtype if out_dtype is None else out_dtype

    # Batch tile: v7x (2 TCs) -> at least num_tc tiles so the "parallel" axis
    # shards across both cores; single-TC v5e/v6e -> one big tile (the grid is
    # a serial loop there, so fewer steps == less fixed per-step overhead).
    num_tc = _num_tensorcores()
    rows_per_tile = pl.cdiv(B, num_tc) if num_tc > 1 else B
    tm = max(8, min(block_m, _round_up(rows_per_tile, 8)))
    grid_m = pl.cdiv(B, tm)  # ragged last tile handled by Pallas (no row mix)

    # Per-core VMEM budget (on v7x each TC holds its own weight copy, and the
    # limit below is per-core, so counting one copy here is already correct).
    wsz = jnp.dtype(w1t.dtype).itemsize
    need = (2 * tm * D * x.dtype.itemsize            # x tiles (2 bufs)
            + 2 * tm * D * jnp.dtype(out_dtype).itemsize   # out tiles (2 bufs)
            + 2 * D * d_pad * wsz                    # W1^T (2 bufs, 1 fetch)
            + 2 * d_pad * D * wsz                    # W2^T (2 bufs, 1 fetch)
            + 2 * 8 * d_pad * 4                      # biases (8-sublane pad)
            + 2 * tm * d_pad * 4)                    # f32 h + cast scratch
    # Generation-aware cap: ~3/4 of physical VMEM (48 MiB on v7x's 64 MiB/TC,
    # ~96 MiB on v5e/v6e's 128 MiB), never below 16 MiB.
    cap = min(100 << 20, (_vmem_capacity_bytes() * 3) // 4)
    vmem_limit = int(min(max(need + (1 << 20), 16 << 20), cap))
    # TODO(synk): when d_hid grows enough that resident weights stress this
    # budget (first on v7x), single-buffer the grid-invariant W1^T/W2^T/bias
    # blocks (pipeline_mode=pl.Buffered(1)) and/or switch to an (M, N, K) grid
    # with an f32 accumulator in scratch.

    flops = 2 * B * D * d_pad + 2 * B * d_pad * D
    bytes_accessed = (B * D * x.dtype.itemsize
                      + D * d_pad * wsz + d_pad * D * wsz
                      + 2 * d_pad * 4
                      + B * D * jnp.dtype(out_dtype).itemsize)
    cost = pl.CostEstimate(flops=flops, transcendentals=0,
                           bytes_accessed=bytes_accessed)

    return pl.pallas_call(
        mlp_kernel,
        out_shape=jax.ShapeDtypeStruct((B, D), out_dtype),
        grid=(grid_m,),
        in_specs=[
            pl.BlockSpec((tm, D), lambda i: (i, 0)),        # x batch tile
            pl.BlockSpec((D, d_pad), lambda i: (0, 0)),     # W1^T (resident)
            pl.BlockSpec((d_pad, D), lambda i: (0, 0)),     # W2^T (resident)
            pl.BlockSpec((2, d_pad), lambda i: (0, 0)),     # [b1; b2]
        ],
        out_specs=pl.BlockSpec((tm, D), lambda i: (i, 0)),
        compiler_params=pltpu.CompilerParams(
            # "parallel" only buys core-sharding on v7x (2 TCs); on v5e/v6e
            # the grid is a serial loop regardless.
            dimension_semantics=("parallel",),
            vmem_limit_bytes=vmem_limit,
        ),
        cost_estimate=cost,
    )(x, w1t, w2t, biases)


def _reference_f32(x, w1, b1, w2, b2):
    h = jnp.maximum(x @ w1.T + b1, 0.0)
    return h @ w2.T + b2


def _reference_bf16(x, w1, b1, w2, b2):
    # Mirrors the kernel's precision choices (bf16 operands, f32 accumulate).
    h = jnp.dot(x.astype(jnp.bfloat16), w1.astype(jnp.bfloat16).T,
                preferred_element_type=jnp.float32) + b1
    h = jnp.maximum(h, 0.0)
    return jnp.dot(h.astype(jnp.bfloat16), w2.astype(jnp.bfloat16).T,
                   preferred_element_type=jnp.float32) + b2


if __name__ == "__main__":
    d_hid = 32
    batch = 16

    key = jax.random.PRNGKey(0)
    kx, kw1, kb1, kw2, kb2 = jax.random.split(key, 5)
    bound = 1.0 / (d_hid ** 0.5)   # torch.nn.Linear default init range
    x = jax.random.normal(kx, (batch, d_hid), dtype=jnp.float32)
    w1 = jax.random.uniform(kw1, (d_hid, d_hid), jnp.float32, -bound, bound)
    b1 = jax.random.uniform(kb1, (d_hid,), jnp.float32, -bound, bound)
    w2 = jax.random.uniform(kw2, (d_hid, d_hid), jnp.float32, -bound, bound)
    b2 = jax.random.uniform(kb2, (d_hid,), jnp.float32, -bound, bound)

    w1t, w2t, biases = prepare_params(w1, b1, w2, b2)
    out = mlp_forward(x, w1t, w2t, biases)
    out = jax.block_until_ready(out)
    assert out.shape == (batch, d_hid)
    assert out.dtype == x.dtype

    ref_bf16 = _reference_bf16(x, w1, b1, w2, b2)
    assert jnp.allclose(out, ref_bf16, atol=1e-2, rtol=1e-2), \
        "mismatch vs bf16-consistent reference"
    ref_f32 = _reference_f32(x, w1, b1, w2, b2)
    assert jnp.allclose(out, ref_f32, atol=5e-2, rtol=5e-2), \
        "mismatch vs f32 reference"
    print("KERNEL_OK")
</pallas_src>

<mosaic_0001>
module attributes {stable_mosaic.version = 11 : i64} {
  func.func @mlp_kernel(%arg0: i32, %arg1: memref<16x32xf32, #tpu.memory_space<vmem>>, %arg2: memref<32x128xbf16, #tpu.memory_space<vmem>>, %arg3: memref<128x32xbf16, #tpu.memory_space<vmem>>, %arg4: memref<2x128xf32, #tpu.memory_space<vmem>>, %arg5: memref<16x32xf32, #tpu.memory_space<vmem>>) attributes {dimension_semantics = [#tpu.dimension_semantics<parallel>], iteration_bounds = array<i64: 1>, scalar_prefetch = 0 : i64, scratch_operands = 0 : i64, tpu.core_type = #tpu.core_type<tc>, window_params = [{transform_indices = @transform_0, window_bounds = array<i64: 16, 32>}, {pipeline_mode = #tpu.pipeline_mode<synchronous>, transform_indices = @transform_1, window_bounds = array<i64: 32, 128>}, {pipeline_mode = #tpu.pipeline_mode<synchronous>, transform_indices = @transform_2, window_bounds = array<i64: 128, 32>}, {pipeline_mode = #tpu.pipeline_mode<synchronous>, transform_indices = @transform_3, window_bounds = array<i64: 2, 128>}, {transform_indices = @transform_4, window_bounds = array<i64: 16, 32>}]} {
    %c0 = arith.constant 0 : index
    %c0_0 = arith.constant 0 : index
    %0 = vector.load %arg4[%c0, %c0_0] : memref<2x128xf32, #tpu.memory_space<vmem>>, vector<2x128xf32>
    %c0_1 = arith.constant 0 : index
    %c0_2 = arith.constant 0 : index
    %1 = vector.load %arg1[%c0_1, %c0_2] : memref<16x32xf32, #tpu.memory_space<vmem>>, vector<16x32xf32>
    %2 = arith.truncf %1 : vector<16x32xf32> to vector<16x32xbf16>
    %c0_3 = arith.constant 0 : index
    %c0_4 = arith.constant 0 : index
    %3 = vector.load %arg2[%c0_3, %c0_4] : memref<32x128xbf16, #tpu.memory_space<vmem>>, vector<32x128xbf16>
    %cst = arith.constant dense<0.000000e+00> : vector<16x128xf32>
    %4 = tpu.matmul %2, %3, %cst {dimension_numbers = #tpu.dot_dimension_numbers<[1], [0], [0], [1], [0, 0, 1, 1], [], []>} : vector<16x32xbf16>, vector<32x128xbf16>, vector<16x128xf32> -> vector<16x128xf32>
    %5 = vector.extract_strided_slice %0 {offsets = [0, 0], sizes = [1, 128], strides = [1, 1]} : vector<2x128xf32> to vector<1x128xf32>
    %6 = vector.broadcast %5 : vector<1x128xf32> to vector<16x128xf32>
    %7 = arith.addf %4, %6 : vector<16x128xf32>
    %cst_5 = arith.constant 0.000000e+00 : f32
    %8 = vector.broadcast %cst_5 : f32 to vector<16x128xf32>
    %9 = arith.maximumf %7, %8 : vector<16x128xf32>
    %10 = arith.truncf %9 : vector<16x128xf32> to vector<16x128xbf16>
    %c0_6 = arith.constant 0 : index
    %c0_7 = arith.constant 0 : index
    %11 = vector.load %arg3[%c0_6, %c0_7] : memref<128x32xbf16, #tpu.memory_space<vmem>>, vector<128x32xbf16>
    %cst_8 = arith.constant dense<0.000000e+00> : vector<16x32xf32>
    %12 = tpu.matmul %10, %11, %cst_8 {dimension_numbers = #tpu.dot_dimension_numbers<[1], [0], [0], [1], [0, 0, 1, 1], [], []>} : vector<16x128xbf16>, vector<128x32xbf16>, vector<16x32xf32> -> vector<16x32xf32>
    %13 = vector.extract_strided_slice %0 {offsets = [1, 0], sizes = [1, 32], strides = [1, 1]} : vector<2x128xf32> to vector<1x32xf32>
    %14 = vector.broadcast %13 : vector<1x32xf32> to vector<16x32xf32>
    %15 = arith.addf %12, %14 : vector<16x32xf32>
    %c0_9 = arith.constant 0 : index
    %c0_10 = arith.constant 0 : index
    %16 = vector.load %arg5[%c0_9, %c0_10] : memref<16x32xf32, #tpu.memory_space<vmem>>, vector<16x32xf32>
    tpu.vector_store %arg5[%c0_9, %c0_10], %15 {strides = array<i32>} : memref<16x32xf32, #tpu.memory_space<vmem>>, vector<16x32xf32>,
    return
  }
  func.func @transform_0(%arg0: i32) -> (i32, i32) {
    %c0_i32 = arith.constant 0 : i32
    %c0_i32_0 = arith.constant 0 : i32
    return %arg0, %c0_i32 : i32, i32
  }
  func.func @transform_1(%arg0: i32) -> (i32, i32) {
    %c0_i32 = arith.constant 0 : i32
    %c0_i32_0 = arith.constant 0 : i32
    %c0_i32_1 = arith.constant 0 : i32
    return %c0_i32, %c0_i32_0 : i32, i32
  }
  func.func @transform_2(%arg0: i32) -> (i32, i32) {
    %c0_i32 = arith.constant 0 : i32
    %c0_i32_0 = arith.constant 0 : i32
    %c0_i32_1 = arith.constant 0 : i32
    return %c0_i32, %c0_i32_0 : i32, i32
  }
  func.func @transform_3(%arg0: i32) -> (i32, i32) {
    %c0_i32 = arith.constant 0 : i32
    %c0_i32_0 = arith.constant 0 : i32
    %c0_i32_1 = arith.constant 0 : i32
    return %c0_i32, %c0_i32_0 : i32, i32
  }
  func.func @transform_4(%arg0: i32) -> (i32, i32) {
    %c0_i32 = arith.constant 0 : i32
    %c0_i32_0 = arith.constant 0 : i32
    return %arg0, %c0_i32 : i32, i32
  }
}

</mosaic_0001>

<bundles_post_ra>
// kernel: mlp_forward.1
= control target key start
LH: loop header
LB: loop body
LE: loop exit
PB: predicated region body
PF: predicated region fallthrough
CT: control target
= control target key end

     0   :  { %s313_s0 = inlined_call_operand.vmem [shape: f32[16,32], index: 0, kind: input, shape index: {}]   ;;  %s314_s1 = inlined_call_operand.vmem [shape: bf16[32,128], index: 1, kind: input, shape index: {}]   ;;  %s315_s2 = inlined_call_operand.vmem [shape: bf16[128,32], index: 2, kind: input, shape index: {}]   ;;  %s316_s3 = inlined_call_operand.vmem [shape: f32[2,128], index: 3, kind: input, shape index: {}]   ;;  %s317_s4 = inlined_call_operand.hbm [shape: f32[16,32], index: 4, kind: output, shape index: {}]  }
   0x1   :  { %v202_v0 = vld [vmem:[%s314_s1 + $0x8] sm:$0xff]  ;;  %v210_v1 = vld [vmem:[%s315_s2 + $0x38] sm:$0xff]  ;;  %v201_v2 = vld [vmem:[%s314_s1] sm:$0xff] }
   0x2   :  { %50 = vmatpush.bf16.msra.mxu0 %v202_v0  ;;  %v20_v3 = vld [vmem:[%s313_s0] sm:$0xff]  ;;  %v21_v4 = vld [vmem:[%s313_s0 + $0x8] sm:$0xff]  ;;  %126 = vmatpush.bf16.msra.mxu1 %v210_v1  ;;  %v209_v5 = vld [vmem:[%s315_s2 + $0x30] sm:$0xff] }
   0x3   :  { %9 = vsyncpa [#allocation3], 0  ;;  %v22_v6 = vpack.c.bf16 %v21_v4, %v20_v3  ;;  %vm40_vm0 = vcmask 261120   ;;  %v208_v7 = vld [vmem:[%s315_s2 + $0x28] sm:$0xff]  ;;  %v207_v8 = vld [vmem:[%s315_s2 + $0x20] sm:$0xff]  ;;  %s241_s16 = smov 128  }
   0x4   :  { %v206_v9 = vld [vmem:[%s315_s2 + $0x18] sm:$0xff]  ;;  %v205_v10 = vld [vmem:[%s315_s2 + $0x10] sm:$0xff]  ;;  %v204_v11 = vld [vmem:[%s315_s2 + $0x8] sm:$0xff]  ;;  %s242_s17 = smov 8  }
   0x5   :  { %v203_v12 = vld [vmem:[%s315_s2] sm:$0xff]  ;;  %s240_s2 = smov [#allocation2]  }
   0x6   :  { %51 = vmatpush.bf16.msra.mxu0 %v201_v2  ;;  %127 = vmatpush.bf16.msra.mxu1 %v209_v5  ;;  %v19_v13 = vld [vmem:[%s316_s3] sm:$0x3]  ;;  %s146_s13 = sshll.u32 %s240_s2, 4  ;;  %s148_s3 = sshll.u32 %s317_s4, 4  ;;  %s147_s13 = int_to_ptr.vmem [resolvable:$true] %s146_s13  ;;  %s149_s3 = int_to_ptr.hbm [resolvable:$true] %s148_s3 }
   0x7   :  { %v27_v15 = vperm.slane %v19_v13, 0  ;;  %v77_v22 = vperm.slane %v19_v13, 1 }
   0x9   :  { %168 = vmatmul.msk.bf16.vlgmr.msra.gmra.mxu0 %vm40_vm0, %v22_v6 }
   0xa   :  { %128 = vmatpush.bf16.msra.mxu1 %v208_v7 }
   0xe   :  { %129 = vmatpush.bf16.msra.mxu1 %v207_v8 }
  0x12   :  { %130 = vmatpush.bf16.msra.mxu1 %v206_v9 }
  0x16   :  { %131 = vmatpush.bf16.msra.mxu1 %v205_v10 }
  0x1a   :  { %132 = vmatpush.bf16.msra.mxu1 %v204_v11 }
  0x1e   :  { %133 = vmatpush.bf16.msra.mxu1 %v203_v12 }
  0x86   :  { %v53_v14 = vpop.f32.mrf.mxu0 }
  0x87   :  { %v54_v16 = vadd.f32 %v53_v14, %v27_v15 }
  0x89   :  { %v58_v19 = vmax.f32 %v54_v16, 0.0 }
  0x8e   :  { %v55_v17 = vpop.f32.mrf.mxu0 }
  0x8f   :  { %v56_v18 = vadd.f32 %v55_v17, %v27_v15 }
  0x91   :  { %v59_v20 = vmax.f32 %v56_v18, 0.0 }
  0x93   :  { %v60_v21 = vpack.c.bf16 %v59_v20, %v58_v19 }
  0x95   :  { %134 = vmatmul.bf16.vlgmr.msra.gmra.mxu1 %v60_v21 }
 0x112   :  { %v135_v23 = vpop.f32.mrf.mxu1 }
 0x113   :  { %v136_v24 = vadd.f32 %v135_v23, %v77_v22 }
 0x115   :  { %140 = vst.msk [vmem:[#allocation2] sm:$0xff] %vm40_vm0, %v136_v24 }
 0x11a   :  { %v137_v25 = vpop.f32.mrf.mxu1 }
 0x11b   :  { %v138_v26 = vadd.f32 %v137_v25, %v77_v22 }
 0x11d   :  { %141 = vst.msk [vmem:[#allocation2 + $0x8] sm:$0xff] %vm40_vm0, %v138_v26 }
 0x11e   :  { %154 = dma.vmem_to_hbm [thread:$0]  %s147_s13, 256, %s149_s3, [#allocation3], %s241_s16, %s241_s16, %s242_s17  }
 0x11f   :  { %238 = dma.done.wait [#allocation3], 256  }
 0x120   :  { %239 = vsyncadd [#allocation3], 4294967040 }
 0x121   :  { %159 = vsyncpa [#allocation3], 1 }

</bundles_post_ra>
